<compile_context>
chip_gen: v6e
topology: v6e:2x2x1
jax: 0.10.0
libtpu: 0.0.40
codegen_flags: <defaults>
</compile_context>

<pallas_src>
import functools

import jax
import jax.numpy as jnp
from jax import lax
from jax.experimental import pallas as pl
from jax.experimental.pallas import tpu as pltpu


# ----------------------------------------------------------------------------
# Fused kernel: per-phase matmul + batch-norm statistics + BN + ReLU.
# grid = (1,): the whole (small) problem is resident in VMEM for one grid step,
# so the conv output can be written to o_ref, re-read for the statistics, and
# overwritten in place with the normalized/activated values.
# ----------------------------------------------------------------------------
def _make_fused_kernel(n_phase, c_out, m_total, eps):
    inv_m = 1.0 / float(m_total)

    def kernel(pt_ref, wt_ref, gamma_ref, beta_ref, o_ref):
        # --- pass 1: per-phase MXU matmul (lane-dense (C_out, M_phase) output),
        #             park conv result in the output block, accumulate channel sums.
        ch_sum = jnp.zeros((c_out, 1), jnp.float32)
        for p in range(n_phase):
            acc = jnp.dot(wt_ref[p], pt_ref[p], preferred_element_type=jnp.float32)
            o_ref[p] = acc
            ch_sum = ch_sum + jnp.sum(acc, axis=1, keepdims=True)
        mean = ch_sum * inv_m

        # --- pass 2: centered (two-pass) variance over the VMEM-resident conv result.
        ch_sq = jnp.zeros((c_out, 1), jnp.float32)
        for p in range(n_phase):
            d = o_ref[p] - mean
            ch_sq = ch_sq + jnp.sum(d * d, axis=1, keepdims=True)
        var = ch_sq * inv_m                      # biased variance (BatchNorm training)
        scale = gamma_ref[...] * lax.rsqrt(var + eps)
        shift = beta_ref[...] - mean * scale

        # --- pass 3: fused BatchNorm + ReLU, overwriting the output in place.
        for p in range(n_phase):
            o_ref[p] = jnp.maximum(o_ref[p] * scale + shift, 0.0)

    return kernel


# ----------------------------------------------------------------------------
# Glue: sub-pixel (stride^2) decomposition of ConvTranspose2d into per-phase
# direct-conv patch / weight matrices (no zero-inserted upsampling materialized).
# ----------------------------------------------------------------------------
def _subpixel_patches(x, weight, stride, padding):
    """Returns
         pt_all: (n_phase, K_p, M_p)    per-phase patches^T (lane dim = M)
         wt_all: (n_phase, C_out, K_p)  per-phase weights^T
         (OH, OW, OH2, OW2)
       Phase index = r * stride + c, with output pixel (oh, ow) = (r + s*oh2, c + s*ow2)
       and M index = n*OH2*OW2 + oh2*OW2 + ow2.
    """
    N, C_in, H, W = x.shape
    _, C_out, kH, kW = weight.shape
    s, p = stride, padding
    OH = (H - 1) * s - 2 * p + kH
    OW = (W - 1) * s - 2 * p + kW
    ph = kH - 1 - p
    pw = kW - 1 - p
    assert OH % s == 0 and OW % s == 0, "phase decomposition assumes stride | OH, OW"
    OH2, OW2 = OH // s, OW // s

    def axis_info(k, pad_amt):
        infos = []
        for r in range(s):
            i0 = (pad_amt - r) % s                 # first direct-conv tap for this phase
            taps = list(range(i0, k, s))           # taps hitting real (non-zero) input
            d = (r + i0 - pad_amt) // s            # exact: r + i0 - pad_amt ≡ 0 (mod s)
            infos.append((taps, i0, d))
        return infos

    row_info = axis_info(kH, ph)
    col_info = axis_info(kW, pw)
    Th = len(row_info[0][0])
    Tw = len(col_info[0][0])
    assert all(len(t) == Th for t, _, _ in row_info), "need stride | kernel_size"
    assert all(len(t) == Tw for t, _, _ in col_info), "need stride | kernel_size"

    padT = max(0, max(-d for _, _, d in row_info))
    padB = max(0, max((OH2 - 1) + (Th - 1) + d for _, _, d in row_info) - (H - 1))
    padL = max(0, max(-e for _, _, e in col_info))
    padR = max(0, max((OW2 - 1) + (Tw - 1) + e for _, _, e in col_info) - (W - 1))
    xp = jnp.pad(x, ((0, 0), (0, 0), (padT, padB), (padL, padR)))

    # direct-conv (spatially flipped) kernel: wf[ci, co, i, j] = W[ci, co, kH-1-i, kW-1-j]
    wf = jnp.flip(weight, axis=(2, 3))

    K_p = C_in * Th * Tw
    M_p = N * OH2 * OW2
    pts, wts = [], []
    for r in range(s):
        _, i0_r, d = row_info[r]
        for c in range(s):
            _, j0_c, e = col_info[c]
            slabs = []
            for ti in range(Th):
                r0 = padT + d + ti
                for tj in range(Tw):
                    c0 = padL + e + tj
                    slabs.append(xp[:, :, r0:r0 + OH2, c0:c0 + OW2])
            pat = jnp.stack(slabs, axis=0)                # (Th*Tw, N, C_in, OH2, OW2)
            pat = pat.transpose(2, 0, 1, 3, 4)            # (C_in, Th*Tw, N, OH2, OW2)
            pts.append(pat.reshape(K_p, M_p))
            w_sub = wf[:, :, i0_r::s, j0_c::s]            # (C_in, C_out, Th, Tw)
            wts.append(w_sub.transpose(1, 0, 2, 3).reshape(C_out, K_p))
    return jnp.stack(pts), jnp.stack(wts), (OH, OW, OH2, OW2)


@functools.partial(jax.jit, static_argnames=("stride", "padding", "eps"))
def gen_base_block(x, weight, bias, gamma, beta, *, stride, padding, eps=1e-5):
    """ConvTranspose2d -> BatchNorm2d (batch stats, training mode) -> ReLU.

    x:      (N, C_in, H, W)        NCHW float32
    weight: (C_in, C_out, kH, kW)  PyTorch ConvTranspose2d layout
    bias:   (C_out,)               unused: cancels exactly under BatchNorm
    gamma, beta: (C_out,)          BatchNorm2d affine params
    returns (N, C_out, OH, OW)
    """
    del bias  # per-channel constant bias cancels in (x - mean); variance unchanged.
    N, C_in, H, W = x.shape
    _, C_out, kH, kW = weight.shape

    pt_all, wt_all, (OH, OW, OH2, OW2) = _subpixel_patches(x, weight, stride, padding)
    n_phase, K_p, M_p = pt_all.shape
    m_total = n_phase * M_p                      # == N * OH * OW

    # TODO(synk): for production-scale C_in/C_out cast patches/weights to bfloat16
    # (keep f32 accumulation); kept f32 here so the tight f32 reference check passes.
    gamma2 = gamma.reshape(C_out, 1).astype(jnp.float32)
    beta2 = beta.reshape(C_out, 1).astype(jnp.float32)

    kernel = _make_fused_kernel(n_phase, C_out, m_total, float(eps))

    out_t = pl.pallas_call(
        kernel,
        out_shape=jax.ShapeDtypeStruct((n_phase, C_out, M_p), jnp.float32),
        grid=(1,),
        in_specs=[
            pl.BlockSpec((n_phase, K_p, M_p), lambda i: (0, 0, 0)),
            pl.BlockSpec((n_phase, C_out, K_p), lambda i: (0, 0, 0)),
            pl.BlockSpec((C_out, 1), lambda i: (0, 0)),
            pl.BlockSpec((C_out, 1), lambda i: (0, 0)),
        ],
        out_specs=pl.BlockSpec((n_phase, C_out, M_p), lambda i: (0, 0, 0)),
        compiler_params=pltpu.CompilerParams(dimension_semantics=("arbitrary",)),
    )(pt_all.astype(jnp.float32), wt_all.astype(jnp.float32), gamma2, beta2)

    # (r, c, co, n, oh2, ow2) -> (n, co, oh2, r, ow2, c) -> (N, C_out, OH, OW)
    s = stride
    out = out_t.reshape(s, s, C_out, N, OH2, OW2)
    out = out.transpose(3, 2, 4, 0, 5, 1).reshape(N, C_out, OH, OW)
    return out


def _reference(x, weight, bias, gamma, beta, stride, padding, eps=1e-5):
    """Pure-JAX reference: ConvTranspose2d -> BatchNorm2d(batch stats) -> ReLU."""
    C_in, C_out, kH, kW = weight.shape
    w_conv = jnp.flip(weight, axis=(2, 3)).transpose(1, 0, 2, 3)  # (C_out, C_in, kH, kW)
    ph = kH - 1 - padding
    pw = kW - 1 - padding
    conv = lax.conv_general_dilated(
        x, w_conv,
        window_strides=(1, 1),
        padding=[(ph, ph), (pw, pw)],
        lhs_dilation=(stride, stride),
        dimension_numbers=("NCHW", "OIHW", "NCHW"),
    ) + bias.reshape(1, C_out, 1, 1)
    mean = conv.mean(axis=(0, 2, 3), keepdims=True)
    var = conv.var(axis=(0, 2, 3), keepdims=True)  # biased
    bn = (conv - mean) / jnp.sqrt(var + eps) * gamma.reshape(1, C_out, 1, 1) \
        + beta.reshape(1, C_out, 1, 1)
    return jnp.maximum(bn, 0.0)


if __name__ == "__main__":
    # GenBaseBlock(input_dim=4, output_dim=8, kernel_size=4, stride=2, padding=1)
    N, C_in, H, W = 2, 4, 16, 16
    C_out, kH, kW, stride, padding = 8, 4, 4, 2, 1

    key = jax.random.PRNGKey(0)
    kx, kw, kb, kg, kbeta = jax.random.split(key, 5)
    x = jax.random.normal(kx, (N, C_in, H, W), jnp.float32)
    weight = 0.02 * jax.random.normal(kw, (C_in, C_out, kH, kW), jnp.float32)
    bias = 0.01 * jax.random.normal(kb, (C_out,), jnp.float32)
    gamma = 1.0 + 0.1 * jax.random.normal(kg, (C_out,), jnp.float32)
    beta = 0.1 * jax.random.normal(kbeta, (C_out,), jnp.float32)

    out = gen_base_block(x, weight, bias, gamma, beta, stride=stride, padding=padding)
    out = jax.block_until_ready(out)

    ref = _reference(x, weight, bias, gamma, beta, stride, padding)
    OH = (H - 1) * stride - 2 * padding + kH
    OW = (W - 1) * stride - 2 * padding + kW
    assert out.shape == (N, C_out, OH, OW)
    assert jnp.allclose(out, ref, atol=1e-4, rtol=1e-4), "mismatch vs reference"

    print("KERNEL_OK")
</pallas_src>

<mosaic_0001>
module attributes {stable_mosaic.version = 11 : i64} {
  func.func @kernel(%arg0: i32, %arg1: memref<4x16x512xf32, #tpu.memory_space<vmem>>, %arg2: memref<4x8x16xf32, #tpu.memory_space<vmem>>, %arg3: memref<8x1xf32, #tpu.memory_space<vmem>>, %arg4: memref<8x1xf32, #tpu.memory_space<vmem>>, %arg5: memref<4x8x512xf32, #tpu.memory_space<vmem>>) attributes {dimension_semantics = [#tpu.dimension_semantics<arbitrary>], iteration_bounds = array<i64: 1>, scalar_prefetch = 0 : i64, scratch_operands = 0 : i64, tpu.core_type = #tpu.core_type<tc>, window_params = [{pipeline_mode = #tpu.pipeline_mode<synchronous>, transform_indices = @transform_0, window_bounds = array<i64: 4, 16, 512>}, {pipeline_mode = #tpu.pipeline_mode<synchronous>, transform_indices = @transform_1, window_bounds = array<i64: 4, 8, 16>}, {pipeline_mode = #tpu.pipeline_mode<synchronous>, transform_indices = @transform_2, window_bounds = array<i64: 8, 1>}, {pipeline_mode = #tpu.pipeline_mode<synchronous>, transform_indices = @transform_3, window_bounds = array<i64: 8, 1>}, {pipeline_mode = #tpu.pipeline_mode<synchronous>, transform_indices = @transform_4, window_bounds = array<i64: 4, 8, 512>}]} {
    %cst = arith.constant 0.000000e+00 : f32
    %0 = vector.broadcast %cst : f32 to vector<8x1xf32>
    %c0 = arith.constant 0 : index
    %c0_0 = arith.constant 0 : index
    %c0_1 = arith.constant 0 : index
    %1 = vector.load %arg2[%c0, %c0_0, %c0_1] : memref<4x8x16xf32, #tpu.memory_space<vmem>>, vector<1x8x16xf32>
    %2 = vector.shape_cast %1 : vector<1x8x16xf32> to vector<8x16xf32>
    %c0_2 = arith.constant 0 : index
    %c0_3 = arith.constant 0 : index
    %c0_4 = arith.constant 0 : index
    %3 = vector.load %arg1[%c0_2, %c0_3, %c0_4] : memref<4x16x512xf32, #tpu.memory_space<vmem>>, vector<1x16x512xf32>
    %4 = vector.shape_cast %3 : vector<1x16x512xf32> to vector<16x512xf32>
    %cst_5 = arith.constant dense<0.000000e+00> : vector<8x512xf32>
    %5 = tpu.matmul %2, %4, %cst_5 {dimension_numbers = #tpu.dot_dimension_numbers<[1], [0], [0], [1], [0, 0, 1, 1], [], []>} : vector<8x16xf32>, vector<16x512xf32>, vector<8x512xf32> -> vector<8x512xf32>
    %c0_6 = arith.constant 0 : index
    %c0_7 = arith.constant 0 : index
    %c0_8 = arith.constant 0 : index
    %6 = vector.load %arg5[%c0_6, %c0_7, %c0_8] : memref<4x8x512xf32, #tpu.memory_space<vmem>>, vector<1x8x512xf32>
    %7 = vector.shape_cast %6 : vector<1x8x512xf32> to vector<8x512xf32>
    %8 = vector.shape_cast %5 : vector<8x512xf32> to vector<1x8x512xf32>
    tpu.vector_store %arg5[%c0_6, %c0_7, %c0_8], %8 {strides = array<i32>} : memref<4x8x512xf32, #tpu.memory_space<vmem>>, vector<1x8x512xf32>,
    %cst_9 = arith.constant dense<0.000000e+00> : vector<8xf32>
    %9 = vector.multi_reduction <add>, %5, %cst_9 [1] : vector<8x512xf32> to vector<8xf32>
    %10 = vector.shape_cast %9 : vector<8xf32> to vector<8x1xf32>
    %11 = arith.addf %0, %10 : vector<8x1xf32>
    %c1 = arith.constant 1 : index
    %c0_10 = arith.constant 0 : index
    %c0_11 = arith.constant 0 : index
    %12 = vector.load %arg2[%c1, %c0_10, %c0_11] : memref<4x8x16xf32, #tpu.memory_space<vmem>>, vector<1x8x16xf32>
    %13 = vector.shape_cast %12 : vector<1x8x16xf32> to vector<8x16xf32>
    %c1_12 = arith.constant 1 : index
    %c0_13 = arith.constant 0 : index
    %c0_14 = arith.constant 0 : index
    %14 = vector.load %arg1[%c1_12, %c0_13, %c0_14] : memref<4x16x512xf32, #tpu.memory_space<vmem>>, vector<1x16x512xf32>
    %15 = vector.shape_cast %14 : vector<1x16x512xf32> to vector<16x512xf32>
    %cst_15 = arith.constant dense<0.000000e+00> : vector<8x512xf32>
    %16 = tpu.matmul %13, %15, %cst_15 {dimension_numbers = #tpu.dot_dimension_numbers<[1], [0], [0], [1], [0, 0, 1, 1], [], []>} : vector<8x16xf32>, vector<16x512xf32>, vector<8x512xf32> -> vector<8x512xf32>
    %c1_16 = arith.constant 1 : index
    %c0_17 = arith.constant 0 : index
    %c0_18 = arith.constant 0 : index
    %17 = vector.load %arg5[%c1_16, %c0_17, %c0_18] : memref<4x8x512xf32, #tpu.memory_space<vmem>>, vector<1x8x512xf32>
    %18 = vector.shape_cast %17 : vector<1x8x512xf32> to vector<8x512xf32>
    %19 = vector.shape_cast %16 : vector<8x512xf32> to vector<1x8x512xf32>
    tpu.vector_store %arg5[%c1_16, %c0_17, %c0_18], %19 {strides = array<i32>} : memref<4x8x512xf32, #tpu.memory_space<vmem>>, vector<1x8x512xf32>,
    %cst_19 = arith.constant dense<0.000000e+00> : vector<8xf32>
    %20 = vector.multi_reduction <add>, %16, %cst_19 [1] : vector<8x512xf32> to vector<8xf32>
    %21 = vector.shape_cast %20 : vector<8xf32> to vector<8x1xf32>
    %22 = arith.addf %11, %21 : vector<8x1xf32>
    %c2 = arith.constant 2 : index
    %c0_20 = arith.constant 0 : index
    %c0_21 = arith.constant 0 : index
    %23 = vector.load %arg2[%c2, %c0_20, %c0_21] : memref<4x8x16xf32, #tpu.memory_space<vmem>>, vector<1x8x16xf32>
    %24 = vector.shape_cast %23 : vector<1x8x16xf32> to vector<8x16xf32>
    %c2_22 = arith.constant 2 : index
    %c0_23 = arith.constant 0 : index
    %c0_24 = arith.constant 0 : index
    %25 = vector.load %arg1[%c2_22, %c0_23, %c0_24] : memref<4x16x512xf32, #tpu.memory_space<vmem>>, vector<1x16x512xf32>
    %26 = vector.shape_cast %25 : vector<1x16x512xf32> to vector<16x512xf32>
    %cst_25 = arith.constant dense<0.000000e+00> : vector<8x512xf32>
    %27 = tpu.matmul %24, %26, %cst_25 {dimension_numbers = #tpu.dot_dimension_numbers<[1], [0], [0], [1], [0, 0, 1, 1], [], []>} : vector<8x16xf32>, vector<16x512xf32>, vector<8x512xf32> -> vector<8x512xf32>
    %c2_26 = arith.constant 2 : index
    %c0_27 = arith.constant 0 : index
    %c0_28 = arith.constant 0 : index
    %28 = vector.load %arg5[%c2_26, %c0_27, %c0_28] : memref<4x8x512xf32, #tpu.memory_space<vmem>>, vector<1x8x512xf32>
    %29 = vector.shape_cast %28 : vector<1x8x512xf32> to vector<8x512xf32>
    %30 = vector.shape_cast %27 : vector<8x512xf32> to vector<1x8x512xf32>
    tpu.vector_store %arg5[%c2_26, %c0_27, %c0_28], %30 {strides = array<i32>} : memref<4x8x512xf32, #tpu.memory_space<vmem>>, vector<1x8x512xf32>,
    %cst_29 = arith.constant dense<0.000000e+00> : vector<8xf32>
    %31 = vector.multi_reduction <add>, %27, %cst_29 [1] : vector<8x512xf32> to vector<8xf32>
    %32 = vector.shape_cast %31 : vector<8xf32> to vector<8x1xf32>
    %33 = arith.addf %22, %32 : vector<8x1xf32>
    %c3 = arith.constant 3 : index
    %c0_30 = arith.constant 0 : index
    %c0_31 = arith.constant 0 : index
    %34 = vector.load %arg2[%c3, %c0_30, %c0_31] : memref<4x8x16xf32, #tpu.memory_space<vmem>>, vector<1x8x16xf32>
    %35 = vector.shape_cast %34 : vector<1x8x16xf32> to vector<8x16xf32>
    %c3_32 = arith.constant 3 : index
    %c0_33 = arith.constant 0 : index
    %c0_34 = arith.constant 0 : index
    %36 = vector.load %arg1[%c3_32, %c0_33, %c0_34] : memref<4x16x512xf32, #tpu.memory_space<vmem>>, vector<1x16x512xf32>
    %37 = vector.shape_cast %36 : vector<1x16x512xf32> to vector<16x512xf32>
    %cst_35 = arith.constant dense<0.000000e+00> : vector<8x512xf32>
    %38 = tpu.matmul %35, %37, %cst_35 {dimension_numbers = #tpu.dot_dimension_numbers<[1], [0], [0], [1], [0, 0, 1, 1], [], []>} : vector<8x16xf32>, vector<16x512xf32>, vector<8x512xf32> -> vector<8x512xf32>
    %c3_36 = arith.constant 3 : index
    %c0_37 = arith.constant 0 : index
    %c0_38 = arith.constant 0 : index
    %39 = vector.load %arg5[%c3_36, %c0_37, %c0_38] : memref<4x8x512xf32, #tpu.memory_space<vmem>>, vector<1x8x512xf32>
    %40 = vector.shape_cast %39 : vector<1x8x512xf32> to vector<8x512xf32>
    %41 = vector.shape_cast %38 : vector<8x512xf32> to vector<1x8x512xf32>
    tpu.vector_store %arg5[%c3_36, %c0_37, %c0_38], %41 {strides = array<i32>} : memref<4x8x512xf32, #tpu.memory_space<vmem>>, vector<1x8x512xf32>,
    %cst_39 = arith.constant dense<0.000000e+00> : vector<8xf32>
    %42 = vector.multi_reduction <add>, %38, %cst_39 [1] : vector<8x512xf32> to vector<8xf32>
    %43 = vector.shape_cast %42 : vector<8xf32> to vector<8x1xf32>
    %44 = arith.addf %33, %43 : vector<8x1xf32>
    %cst_40 = arith.constant 4.8828125E-4 : f32
    %45 = vector.broadcast %cst_40 : f32 to vector<8x1xf32>
    %46 = arith.mulf %44, %45 : vector<8x1xf32>
    %cst_41 = arith.constant 0.000000e+00 : f32
    %47 = vector.broadcast %cst_41 : f32 to vector<8x1xf32>
    %c0_42 = arith.constant 0 : index
    %c0_43 = arith.constant 0 : index
    %c0_44 = arith.constant 0 : index
    %48 = vector.load %arg5[%c0_42, %c0_43, %c0_44] : memref<4x8x512xf32, #tpu.memory_space<vmem>>, vector<1x8x512xf32>
    %49 = vector.shape_cast %48 : vector<1x8x512xf32> to vector<8x512xf32>
    %50 = vector.broadcast %46 : vector<8x1xf32> to vector<8x512xf32>
    %51 = arith.subf %49, %50 : vector<8x512xf32>
    %52 = arith.mulf %51, %51 : vector<8x512xf32>
    %cst_45 = arith.constant dense<0.000000e+00> : vector<8xf32>
    %53 = vector.multi_reduction <add>, %52, %cst_45 [1] : vector<8x512xf32> to vector<8xf32>
    %54 = vector.shape_cast %53 : vector<8xf32> to vector<8x1xf32>
    %55 = arith.addf %47, %54 : vector<8x1xf32>
    %c1_46 = arith.constant 1 : index
    %c0_47 = arith.constant 0 : index
    %c0_48 = arith.constant 0 : index
    %56 = vector.load %arg5[%c1_46, %c0_47, %c0_48] : memref<4x8x512xf32, #tpu.memory_space<vmem>>, vector<1x8x512xf32>
    %57 = vector.shape_cast %56 : vector<1x8x512xf32> to vector<8x512xf32>
    %58 = vector.broadcast %46 : vector<8x1xf32> to vector<8x512xf32>
    %59 = arith.subf %57, %58 : vector<8x512xf32>
    %60 = arith.mulf %59, %59 : vector<8x512xf32>
    %cst_49 = arith.constant dense<0.000000e+00> : vector<8xf32>
    %61 = vector.multi_reduction <add>, %60, %cst_49 [1] : vector<8x512xf32> to vector<8xf32>
    %62 = vector.shape_cast %61 : vector<8xf32> to vector<8x1xf32>
    %63 = arith.addf %55, %62 : vector<8x1xf32>
    %c2_50 = arith.constant 2 : index
    %c0_51 = arith.constant 0 : index
    %c0_52 = arith.constant 0 : index
    %64 = vector.load %arg5[%c2_50, %c0_51, %c0_52] : memref<4x8x512xf32, #tpu.memory_space<vmem>>, vector<1x8x512xf32>
    %65 = vector.shape_cast %64 : vector<1x8x512xf32> to vector<8x512xf32>
    %66 = vector.broadcast %46 : vector<8x1xf32> to vector<8x512xf32>
    %67 = arith.subf %65, %66 : vector<8x512xf32>
    %68 = arith.mulf %67, %67 : vector<8x512xf32>
    %cst_53 = arith.constant dense<0.000000e+00> : vector<8xf32>
    %69 = vector.multi_reduction <add>, %68, %cst_53 [1] : vector<8x512xf32> to vector<8xf32>
    %70 = vector.shape_cast %69 : vector<8xf32> to vector<8x1xf32>
    %71 = arith.addf %63, %70 : vector<8x1xf32>
    %c3_54 = arith.constant 3 : index
    %c0_55 = arith.constant 0 : index
    %c0_56 = arith.constant 0 : index
    %72 = vector.load %arg5[%c3_54, %c0_55, %c0_56] : memref<4x8x512xf32, #tpu.memory_space<vmem>>, vector<1x8x512xf32>
    %73 = vector.shape_cast %72 : vector<1x8x512xf32> to vector<8x512xf32>
    %74 = vector.broadcast %46 : vector<8x1xf32> to vector<8x512xf32>
    %75 = arith.subf %73, %74 : vector<8x512xf32>
    %76 = arith.mulf %75, %75 : vector<8x512xf32>
    %cst_57 = arith.constant dense<0.000000e+00> : vector<8xf32>
    %77 = vector.multi_reduction <add>, %76, %cst_57 [1] : vector<8x512xf32> to vector<8xf32>
    %78 = vector.shape_cast %77 : vector<8xf32> to vector<8x1xf32>
    %79 = arith.addf %71, %78 : vector<8x1xf32>
    %cst_58 = arith.constant 4.8828125E-4 : f32
    %80 = vector.broadcast %cst_58 : f32 to vector<8x1xf32>
    %81 = arith.mulf %79, %80 : vector<8x1xf32>
    %c0_59 = arith.constant 0 : index
    %c0_60 = arith.constant 0 : index
    %82 = vector.load %arg3[%c0_59, %c0_60] : memref<8x1xf32, #tpu.memory_space<vmem>>, vector<8x1xf32>
    %cst_61 = arith.constant 9.99999974E-6 : f32
    %83 = vector.broadcast %cst_61 : f32 to vector<8x1xf32>
    %84 = arith.addf %81, %83 : vector<8x1xf32>
    %85 = math.rsqrt %84 : vector<8x1xf32>
    %86 = arith.mulf %82, %85 : vector<8x1xf32>
    %c0_62 = arith.constant 0 : index
    %c0_63 = arith.constant 0 : index
    %87 = vector.load %arg4[%c0_62, %c0_63] : memref<8x1xf32, #tpu.memory_space<vmem>>, vector<8x1xf32>
    %88 = arith.mulf %46, %86 : vector<8x1xf32>
    %89 = arith.subf %87, %88 : vector<8x1xf32>
    %c0_64 = arith.constant 0 : index
    %c0_65 = arith.constant 0 : index
    %c0_66 = arith.constant 0 : index
    %90 = vector.load %arg5[%c0_64, %c0_65, %c0_66] : memref<4x8x512xf32, #tpu.memory_space<vmem>>, vector<1x8x512xf32>
    %91 = vector.shape_cast %90 : vector<1x8x512xf32> to vector<8x512xf32>
    %92 = vector.broadcast %86 : vector<8x1xf32> to vector<8x512xf32>
    %93 = arith.mulf %91, %92 : vector<8x512xf32>
    %94 = vector.broadcast %89 : vector<8x1xf32> to vector<8x512xf32>
    %95 = arith.addf %93, %94 : vector<8x512xf32>
    %cst_67 = arith.constant 0.000000e+00 : f32
    %96 = vector.broadcast %cst_67 : f32 to vector<8x512xf32>
    %97 = arith.maximumf %95, %96 : vector<8x512xf32>
    %c0_68 = arith.constant 0 : index
    %c0_69 = arith.constant 0 : index
    %c0_70 = arith.constant 0 : index
    %98 = vector.load %arg5[%c0_68, %c0_69, %c0_70] : memref<4x8x512xf32, #tpu.memory_space<vmem>>, vector<1x8x512xf32>
    %99 = vector.shape_cast %98 : vector<1x8x512xf32> to vector<8x512xf32>
    %100 = vector.shape_cast %97 : vector<8x512xf32> to vector<1x8x512xf32>
    tpu.vector_store %arg5[%c0_68, %c0_69, %c0_70], %100 {strides = array<i32>} : memref<4x8x512xf32, #tpu.memory_space<vmem>>, vector<1x8x512xf32>,
    %c1_71 = arith.constant 1 : index
    %c0_72 = arith.constant 0 : index
    %c0_73 = arith.constant 0 : index
    %101 = vector.load %arg5[%c1_71, %c0_72, %c0_73] : memref<4x8x512xf32, #tpu.memory_space<vmem>>, vector<1x8x512xf32>
    %102 = vector.shape_cast %101 : vector<1x8x512xf32> to vector<8x512xf32>
    %103 = vector.broadcast %86 : vector<8x1xf32> to vector<8x512xf32>
    %104 = arith.mulf %102, %103 : vector<8x512xf32>
    %105 = vector.broadcast %89 : vector<8x1xf32> to vector<8x512xf32>
    %106 = arith.addf %104, %105 : vector<8x512xf32>
    %cst_74 = arith.constant 0.000000e+00 : f32
    %107 = vector.broadcast %cst_74 : f32 to vector<8x512xf32>
    %108 = arith.maximumf %106, %107 : vector<8x512xf32>
    %c1_75 = arith.constant 1 : index
    %c0_76 = arith.constant 0 : index
    %c0_77 = arith.constant 0 : index
    %109 = vector.load %arg5[%c1_75, %c0_76, %c0_77] : memref<4x8x512xf32, #tpu.memory_space<vmem>>, vector<1x8x512xf32>
    %110 = vector.shape_cast %109 : vector<1x8x512xf32> to vector<8x512xf32>
    %111 = vector.shape_cast %108 : vector<8x512xf32> to vector<1x8x512xf32>
    tpu.vector_store %arg5[%c1_75, %c0_76, %c0_77], %111 {strides = array<i32>} : memref<4x8x512xf32, #tpu.memory_space<vmem>>, vector<1x8x512xf32>,
    %c2_78 = arith.constant 2 : index
    %c0_79 = arith.constant 0 : index
    %c0_80 = arith.constant 0 : index
    %112 = vector.load %arg5[%c2_78, %c0_79, %c0_80] : memref<4x8x512xf32, #tpu.memory_space<vmem>>, vector<1x8x512xf32>
    %113 = vector.shape_cast %112 : vector<1x8x512xf32> to vector<8x512xf32>
    %114 = vector.broadcast %86 : vector<8x1xf32> to vector<8x512xf32>
    %115 = arith.mulf %113, %114 : vector<8x512xf32>
    %116 = vector.broadcast %89 : vector<8x1xf32> to vector<8x512xf32>
    %117 = arith.addf %115, %116 : vector<8x512xf32>
    %cst_81 = arith.constant 0.000000e+00 : f32
    %118 = vector.broadcast %cst_81 : f32 to vector<8x512xf32>
    %119 = arith.maximumf %117, %118 : vector<8x512xf32>
    %c2_82 = arith.constant 2 : index
    %c0_83 = arith.constant 0 : index
    %c0_84 = arith.constant 0 : index
    %120 = vector.load %arg5[%c2_82, %c0_83, %c0_84] : memref<4x8x512xf32, #tpu.memory_space<vmem>>, vector<1x8x512xf32>
    %121 = vector.shape_cast %120 : vector<1x8x512xf32> to vector<8x512xf32>
    %122 = vector.shape_cast %119 : vector<8x512xf32> to vector<1x8x512xf32>
    tpu.vector_store %arg5[%c2_82, %c0_83, %c0_84], %122 {strides = array<i32>} : memref<4x8x512xf32, #tpu.memory_space<vmem>>, vector<1x8x512xf32>,
    %c3_85 = arith.constant 3 : index
    %c0_86 = arith.constant 0 : index
    %c0_87 = arith.constant 0 : index
    %123 = vector.load %arg5[%c3_85, %c0_86, %c0_87] : memref<4x8x512xf32, #tpu.memory_space<vmem>>, vector<1x8x512xf32>
    %124 = vector.shape_cast %123 : vector<1x8x512xf32> to vector<8x512xf32>
    %125 = vector.broadcast %86 : vector<8x1xf32> to vector<8x512xf32>
    %126 = arith.mulf %124, %125 : vector<8x512xf32>
    %127 = vector.broadcast %89 : vector<8x1xf32> to vector<8x512xf32>
    %128 = arith.addf %126, %127 : vector<8x512xf32>
    %cst_88 = arith.constant 0.000000e+00 : f32
    %129 = vector.broadcast %cst_88 : f32 to vector<8x512xf32>
    %130 = arith.maximumf %128, %129 : vector<8x512xf32>
    %c3_89 = arith.constant 3 : index
    %c0_90 = arith.constant 0 : index
    %c0_91 = arith.constant 0 : index
    %131 = vector.load %arg5[%c3_89, %c0_90, %c0_91] : memref<4x8x512xf32, #tpu.memory_space<vmem>>, vector<1x8x512xf32>
    %132 = vector.shape_cast %131 : vector<1x8x512xf32> to vector<8x512xf32>
    %133 = vector.shape_cast %130 : vector<8x512xf32> to vector<1x8x512xf32>
    tpu.vector_store %arg5[%c3_89, %c0_90, %c0_91], %133 {strides = array<i32>} : memref<4x8x512xf32, #tpu.memory_space<vmem>>, vector<1x8x512xf32>,
    return
  }
  func.func @transform_0(%arg0: i32) -> (i32, i32, i32) {
    %c0_i32 = arith.constant 0 : i32
    %c0_i32_0 = arith.constant 0 : i32
    %c0_i32_1 = arith.constant 0 : i32
    %c0_i32_2 = arith.constant 0 : i32
    return %c0_i32, %c0_i32_0, %c0_i32_1 : i32, i32, i32
  }
  func.func @transform_1(%arg0: i32) -> (i32, i32, i32) {
    %c0_i32 = arith.constant 0 : i32
    %c0_i32_0 = arith.constant 0 : i32
    %c0_i32_1 = arith.constant 0 : i32
    %c0_i32_2 = arith.constant 0 : i32
    return %c0_i32, %c0_i32_0, %c0_i32_1 : i32, i32, i32
  }
  func.func @transform_2(%arg0: i32) -> (i32, i32) {
    %c0_i32 = arith.constant 0 : i32
    %c0_i32_0 = arith.constant 0 : i32
    %c0_i32_1 = arith.constant 0 : i32
    return %c0_i32, %c0_i32_0 : i32, i32
  }
  func.func @transform_3(%arg0: i32) -> (i32, i32) {
    %c0_i32 = arith.constant 0 : i32
    %c0_i32_0 = arith.constant 0 : i32
    %c0_i32_1 = arith.constant 0 : i32
    return %c0_i32, %c0_i32_0 : i32, i32
  }
  func.func @transform_4(%arg0: i32) -> (i32, i32, i32) {
    %c0_i32 = arith.constant 0 : i32
    %c0_i32_0 = arith.constant 0 : i32
    %c0_i32_1 = arith.constant 0 : i32
    %c0_i32_2 = arith.constant 0 : i32
    return %c0_i32, %c0_i32_0, %c0_i32_1 : i32, i32, i32
  }
}

</mosaic_0001>

<bundles_post_ra>
// kernel: reverse
= control target key start
LH: loop header
LB: loop body
LE: loop exit
PB: predicated region body
PF: predicated region fallthrough
CT: control target
= control target key end

     0   :  { %v82_v8 = vld [vmem:[#allocation1 + $0x1c] sm:$0x3]  ;;  %v92_v9 = vld [vmem:[#allocation1 + $0x18] sm:$0x3]  ;;  %v102_v10 = vld [vmem:[#allocation1 + $0x14] sm:$0x3]  ;;  %v160_v16 = vlaneseq  ;;  %s484_s0 = inlined_call_operand.vmem [shape: f32[4,8,2,2], index: 0, kind: input, shape index: {}]   ;;  %s485_s1 = inlined_call_operand.vmem [shape: f32[4,8,2,2], index: 1, kind: output, shape index: {}]  }
   0x1   :  { %v19_v0 = vld [vmem:[%s484_s0] sm:$0x3]  ;;  %v21_v1 = vld [vmem:[%s484_s0 + $0x2] sm:$0x3]  ;;  %v23_v2 = vld [vmem:[%s484_s0 + $0x4] sm:$0x3] }
   0x2   :  { %20 = vst [vmem:[#allocation1 + $0x2] sm:$0x3] %v19_v0  ;;  %22 = vst [vmem:[#allocation1 + $0x6] sm:$0x3] %v21_v1  ;;  %v25_v3 = vld [vmem:[%s484_s0 + $0x6] sm:$0x3] }
   0x3   :  { %24 = vst [vmem:[#allocation1 + $0xa] sm:$0x3] %v23_v2  ;;  %v27_v4 = vld [vmem:[%s484_s0 + $0x8] sm:$0x3]  ;;  %v29_v5 = vld [vmem:[%s484_s0 + $0xa] sm:$0x3] }
   0x4   :  { %26 = vst [vmem:[#allocation1 + $0xe] sm:$0x3] %v25_v3  ;;  %28 = vst [vmem:[#allocation1 + $0x12] sm:$0x3] %v27_v4  ;;  %v31_v6 = vld [vmem:[%s484_s0 + $0xc] sm:$0x3] }
   0x5   :  { %30 = vst [vmem:[#allocation1 + $0x16] sm:$0x3] %v29_v5  ;;  %v33_v7 = vld [vmem:[%s484_s0 + $0xe] sm:$0x3]  ;;  %32 = vst [vmem:[#allocation1 + $0x1a] sm:$0x3] %v31_v6 }
   0x6   :  { %34 = vst [vmem:[#allocation1 + $0x1e] sm:$0x3] %v33_v7  ;;  %84 = vst [vmem:[#allocation0 + $0x70] sm:$0x3] %v82_v8  ;;  %v112_v11 = vld [vmem:[#allocation1 + $0x10] sm:$0x3] }
   0x7   :  { %94 = vst [vmem:[#allocation0 + $0x60] sm:$0x3] %v92_v9  ;;  %104 = vst [vmem:[#allocation0 + $0x50] sm:$0x3] %v102_v10  ;;  %v122_v12 = vld [vmem:[#allocation1 + $0xc] sm:$0x3] }
   0x8   :  { %114 = vst [vmem:[#allocation0 + $0x40] sm:$0x3] %v112_v11  ;;  %v132_v13 = vld [vmem:[#allocation1 + $0x8] sm:$0x3]  ;;  %v142_v14 = vld [vmem:[#allocation1 + $0x4] sm:$0x3] }
   0x9   :  { %124 = vst [vmem:[#allocation0 + $0x30] sm:$0x3] %v122_v12  ;;  %134 = vst [vmem:[#allocation0 + $0x20] sm:$0x3] %v132_v13  ;;  %v149_v15 = vld [vmem:[#allocation1] sm:$0x3] }
   0xa   :  { %144 = vst [vmem:[#allocation0 + $0x10] sm:$0x3] %v142_v14  ;;  %150 = vst [vmem:[#allocation0] sm:$0x3] %v149_v15  ;;  %v127_v17 = vld [vmem:[#allocation1 + $0xa] sm:$0x3] }
   0xb   :  { %v137_v18 = vld [vmem:[#allocation1 + $0x6] sm:$0x3]  ;;  %v146_v19 = vld [vmem:[#allocation1 + $0x2] sm:$0x3]  ;;  %v107_v21 = vld [vmem:[#allocation1 + $0x12] sm:$0x3] }
   0xc   :  { %v97_v20 = vld [vmem:[#allocation1 + $0x16] sm:$0x3]  ;;  %v117_v22 = vld [vmem:[#allocation1 + $0xe] sm:$0x3]  ;;  %129 = vst [vmem:[#allocation0 + $0x28] sm:$0x3] %v127_v17 }
   0xd   :  { %139 = vst [vmem:[#allocation0 + $0x18] sm:$0x3] %v137_v18  ;;  %148 = vst [vmem:[#allocation0 + $0x8] sm:$0x3] %v146_v19  ;;  %v77_v23 = vld [vmem:[#allocation1 + $0x1e] sm:$0x3] }
   0xe   :  { %v87_v24 = vld [vmem:[#allocation1 + $0x1a] sm:$0x3]  ;;  %99 = vst [vmem:[#allocation0 + $0x58] sm:$0x3] %v97_v20  ;;  %109 = vst [vmem:[#allocation0 + $0x48] sm:$0x3] %v107_v21 }
   0xf   :  { %119 = vst [vmem:[#allocation0 + $0x38] sm:$0x3] %v117_v22  ;;  %v236_v25 = vld [vmem:[#allocation0 + $0x77] ss:$-1 sm:$0xff]  ;;  %79 = vst [vmem:[#allocation0 + $0x78] sm:$0x3] %v77_v23 }
  0x10   :  { %89 = vst [vmem:[#allocation0 + $0x68] sm:$0x3] %v87_v24  ;;  %v161_v26 = vshrl.u32 %v160_v16, 7  ;;  %v208_v27 = vld [vmem:[#allocation0 + $0x57] ss:$-1 sm:$0xff]  ;;  %v237_v29 = vrot.slane %v236_v25, 6 }
  0x11   :  { %v222_v28 = vld [vmem:[#allocation0 + $0x47] ss:$-1 sm:$0xff]  ;;  %v153_v30 = vld [vmem:[#allocation0 + $0x17] ss:$-1 sm:$0xff]  ;;  %v209_v37 = vrot.slane %v208_v27, 6 }
  0x12   :  { %v180_v31 = vld [vmem:[#allocation0 + $0x37] ss:$-1 sm:$0xff]  ;;  %v194_v32 = vld [vmem:[#allocation0 + $0x27] ss:$-1 sm:$0xff]  ;;  %v154_v33 = vrot.slane %v153_v30, 6  ;;  %238 = vst [vmem:[#allocation2 + $0x30] sm:$0xff] %v237_v29 }
  0x13   :  { %v166_v34 = vld [vmem:[#allocation0 + $0x7] ss:$-1 sm:$0xff]  ;;  %v181_v35 = vrot.slane %v180_v31, 6  ;;  %v195_v36 = vrot.slane %v194_v32, 6  ;;  %v223_v39 = vrot.slane %v222_v28, 6  ;;  %vm162_vm0 = vcmp.lt.s32.totalorder %v161_v26, 2 }
  0x14   :  { %v167_v38 = vrot.slane %v166_v34, 6  ;;  %v250_v40 = vld [vmem:[#allocation0 + $0x67] ss:$-1 sm:$0xff]  ;;  %155 = vst [vmem:[#allocation2] sm:$0xff] %v154_v33  ;;  %210 = vst [vmem:[#allocation2 + $0x20] sm:$0xff] %v209_v37 }
  0x15   :  { %182 = vst [vmem:[#allocation2 + $0x10] sm:$0xff] %v181_v35  ;;  %196 = vst [vmem:[#allocation2 + $0x18] sm:$0xff] %v195_v36  ;;  %v251_v41 = vrot.slane %v250_v40, 6  ;;  %v158_v42 = vld [vmem:[#allocation0 + $0x1f] ss:$-1 sm:$0xff] }
  0x16   :  { %168 = vst [vmem:[#allocation2 + $0x8] sm:$0xff] %v167_v38  ;;  %v171_v43 = vld [vmem:[#allocation0 + $0xf] ss:$-1 sm:$0xff]  ;;  %224 = vst [vmem:[#allocation2 + $0x28] sm:$0xff] %v223_v39  ;;  %v159_v45 = vrot.slane %v158_v42, 6 }
  0x17   :  { %v199_v44 = vld [vmem:[#allocation0 + $0x2f] ss:$-1 sm:$0xff]  ;;  %v172_v46 = vrot.slane %v171_v43, 6  ;;  %v185_v47 = vld [vmem:[#allocation0 + $0x3f] ss:$-1 sm:$0xff]  ;;  %252 = vst [vmem:[#allocation2 + $0x38] sm:$0xff] %v251_v41 }
  0x18   :  { %v200_v48 = vrot.slane %v199_v44, 6  ;;  %v186_v49 = vrot.slane %v185_v47, 6  ;;  %v213_v50 = vld [vmem:[#allocation0 + $0x5f] ss:$-1 sm:$0xff]  ;;  %v227_v51 = vld [vmem:[#allocation0 + $0x4f] ss:$-1 sm:$0xff] }
  0x19   :  { %163 = vst.msk [vmem:[#allocation2] sm:$0xff] %vm162_vm0, %v159_v45  ;;  %176 = vst.msk [vmem:[#allocation2 + $0x8] sm:$0xff] %vm162_vm0, %v172_v46  ;;  %v214_v52 = vrot.slane %v213_v50, 6  ;;  %v228_v53 = vrot.slane %v227_v51, 6  ;;  %v241_v54 = vld [vmem:[#allocation0 + $0x7f] ss:$-1 sm:$0xff] }
  0x1a   :  { %204 = vst.msk [vmem:[#allocation2 + $0x18] sm:$0xff] %vm162_vm0, %v200_v48  ;;  %v255_v55 = vld [vmem:[#allocation0 + $0x6f] ss:$-1 sm:$0xff]  ;;  %190 = vst.msk [vmem:[#allocation2 + $0x10] sm:$0xff] %vm162_vm0, %v186_v49  ;;  %v242_v56 = vrot.slane %v241_v54, 6 }
  0x1b   :  { %v256_v57 = vrot.slane %v255_v55, 6  ;;  %218 = vst.msk [vmem:[#allocation2 + $0x20] sm:$0xff] %vm162_vm0, %v214_v52  ;;  %232 = vst.msk [vmem:[#allocation2 + $0x28] sm:$0xff] %vm162_vm0, %v228_v53 }
  0x1c   :  { %246 = vst.msk [vmem:[#allocation2 + $0x30] sm:$0xff] %vm162_vm0, %v242_v56 }
  0x1d   :  { %260 = vst.msk [vmem:[#allocation2 + $0x38] sm:$0xff] %vm162_vm0, %v256_v57 }
  0x20   :  { %v265_v58 = vld [vmem:[#allocation2] sm:$0x3]  ;;  %v270_v59 = vld [vmem:[#allocation2 + $0x8] sm:$0x3] }
  0x21   :  { %v283_v60 = vld [vmem:[#allocation2 + $0x18] sm:$0x3]  ;;  %268 = vst [vmem:[#allocation3] sm:$0x3] %v265_v58  ;;  %274 = vst [vmem:[#allocation3 + $0x2] sm:$0x3] %v270_v59 }
  0x22   :  { %v276_v61 = vld [vmem:[#allocation2 + $0x10] sm:$0x3]  ;;  %288 = vst [vmem:[#allocation3 + $0x6] sm:$0x3] %v283_v60  ;;  %v290_v62 = vld [vmem:[#allocation2 + $0x20] sm:$0x3] }
  0x23   :  { %281 = vst [vmem:[#allocation3 + $0x4] sm:$0x3] %v276_v61  ;;  %v297_v63 = vld [vmem:[#allocation2 + $0x28] sm:$0x3]  ;;  %295 = vst [vmem:[#allocation3 + $0x8] sm:$0x3] %v290_v62 }
  0x24   :  { %302 = vst [vmem:[#allocation3 + $0xa] sm:$0x3] %v297_v63  ;;  %v304_v0 = vld [vmem:[#allocation2 + $0x30] sm:$0x3]  ;;  %v311_v1 = vld [vmem:[#allocation2 + $0x38] sm:$0x3] }
  0x25   :  { %309 = vst [vmem:[#allocation3 + $0xc] sm:$0x3] %v304_v0  ;;  %316 = vst [vmem:[#allocation3 + $0xe] sm:$0x3] %v311_v1 }
  0x2a   :  { %v333_v2 = vld [vmem:[#allocation3] sm:$0xff]  }
  0x2b   :  { %334 = vst [vmem:[%s485_s1] sm:$0xff] %v333_v2  }
  0x2c   :  { %v341_v3 = vld [vmem:[#allocation3 + $0x8] sm:$0xff]  }
  0x2d   :  { %342 = vst [vmem:[%s485_s1 + $0x8] sm:$0xff] %v341_v3  }

// kernel: gen_base_block.1
= control target key start
LH: loop header
LB: loop body
LE: loop exit
PB: predicated region body
PF: predicated region fallthrough
CT: control target
= control target key end

     0   :  { %v943_v3 = vmov 0.0   ;;  %vm26_vm0 = vcmask 130048   ;;  %s1247_s0 = inlined_call_operand.vmem [shape: f32[4,16,512], index: 0, kind: input, shape index: {}]   ;;  %s1248_s1 = inlined_call_operand.vmem [shape: f32[4,8,16], index: 1, kind: input, shape index: {}]   ;;  %s1249_s2 = inlined_call_operand.vmem [shape: f32[8,1], index: 2, kind: input, shape index: {}]   ;;  %s1250_s3 = inlined_call_operand.vmem [shape: f32[8,1], index: 3, kind: input, shape index: {}]   ;;  %s1251_s4 = inlined_call_operand.vmem [shape: f32[4,8,512], index: 4, kind: output, shape index: {}]  }
   0x1   :  { %v23_v0 = vld [vmem:[%s1247_s0 + $0x28] sm:$0xff]  ;;  %v22_v1 = vld [vmem:[%s1247_s0 + $0x20] sm:$0xff]  ;;  %94 = vmatprep.mubr.f32.mxu0 %v943_v3  ;;  %165 = vmatprep.mubr.f32.mxu1 %v943_v3  ;;  %v25_v5 = vld [vmem:[%s1247_s0 + $0x38] sm:$0xff] }
   0x2   :  { %v19_v2 = vld [vmem:[%s1247_s0 + $0x8] sm:$0xff]  ;;  %58 = vmatprep.subr.mxu0 %v23_v0  ;;  %v18_v4 = vld [vmem:[%s1247_s0] sm:$0xff]  ;;  %129 = vmatprep.subr.mxu1 %v25_v5  ;;  %v24_v7 = vld [vmem:[%s1247_s0 + $0x30] sm:$0xff] }
   0x3   :  { %v17_v6 = vld [vmem:[%s1248_s1] sm:$0xff]  ;;  %59 = vmatpush1.msra.mxu0 %v22_v1  ;;  %v862_v8 = vld [vmem:[%s1247_s0 + $0x68] sm:$0xff]  ;;  %v21_v9 = vld [vmem:[%s1247_s0 + $0x18] sm:$0xff]  ;;  %130 = vmatpush1.msra.mxu1 %v24_v7 }
   0x4   :  { %60 = vmatprep.subr.mxu0 %v19_v2  ;;  %v861_v10 = vld [vmem:[%s1247_s0 + $0x60] sm:$0xff]  ;;  %v20_v11 = vld [vmem:[%s1247_s0 + $0x10] sm:$0xff]  ;;  %131 = vmatprep.subr.mxu1 %v21_v9  ;;  %v858_v12 = vld [vmem:[%s1247_s0 + $0x48] sm:$0xff] }
   0x5   :  { %61 = vmatpush1.msra.mxu0 %v18_v4  ;;  %v857_v13 = vld [vmem:[%s1247_s0 + $0x40] sm:$0xff]  ;;  %132 = vmatpush1.msra.mxu1 %v20_v11  ;;  %v864_v14 = vld [vmem:[%s1247_s0 + $0x78] sm:$0xff]  ;;  %v856_v15 = vld [vmem:[%s1248_s1 + $0x8] sm:$0xff] }
   0x6   :  { %854 = vmatmul.mubr.msk.f32.vlgmr.msra.gmra.mxu0 %vm26_vm0, %v17_v6  ;;  %224 = vmatprep.subr.mxu0 %v862_v8  ;;  %v863_v16 = vld [vmem:[%s1247_s0 + $0x70] sm:$0xff]  ;;  %v877_v17 = vld [vmem:[%s1247_s0 + $0xa8] sm:$0xff]  ;;  %v860_v18 = vld [vmem:[%s1247_s0 + $0x58] sm:$0xff] }
   0x7   :  { %225 = vmatpush1.msra.mxu0 %v861_v10  ;;  %855 = vmatmul.mubr.msk.f32.vlgmr.msra.gmra.mxu1 %vm26_vm0, %v17_v6  ;;  %v876_v19 = vld [vmem:[%s1247_s0 + $0xa0] sm:$0xff]  ;;  %v859_v20 = vld [vmem:[%s1247_s0 + $0x50] sm:$0xff]  ;;  %v873_v21 = vld [vmem:[%s1247_s0 + $0x88] sm:$0xff] }
   0x8   :  { %226 = vmatprep.subr.mxu0 %v858_v12  ;;  %260 = vmatprep.mubr.f32.mxu0 %v943_v3  ;;  %v872_v22 = vld [vmem:[%s1247_s0 + $0x80] sm:$0xff]  ;;  %v879_v23 = vld [vmem:[%s1247_s0 + $0xb8] sm:$0xff]  ;;  %v871_v24 = vld [vmem:[%s1248_s1 + $0x10] sm:$0xff] }
   0x9   :  { %227 = vmatpush1.msra.mxu0 %v857_v13  ;;  %295 = vmatprep.subr.mxu1 %v864_v14  ;;  %v878_v25 = vld [vmem:[%s1247_s0 + $0xb0] sm:$0xff]  ;;  %v892_v26 = vld [vmem:[%s1247_s0 + $0xe8] sm:$0xff]  ;;  %v875_v27 = vld [vmem:[%s1247_s0 + $0x98] sm:$0xff] }
   0xa   :  { %865 = vmatmul.mubr.msk.f32.vlgmr.msra.gmra.mxu0 %vm26_vm0, %v856_v15  ;;  %296 = vmatpush1.msra.mxu1 %v863_v16  ;;  %v891_v28 = vld [vmem:[%s1247_s0 + $0xe0] sm:$0xff]  ;;  %v874_v29 = vld [vmem:[%s1247_s0 + $0x90] sm:$0xff]  ;;  %v888_v30 = vld [vmem:[%s1247_s0 + $0xc8] sm:$0xff] }
   0xb   :  { %391 = vmatprep.subr.mxu0 %v877_v17  ;;  %297 = vmatprep.subr.mxu1 %v860_v18  ;;  %v887_v31 = vld [vmem:[%s1247_s0 + $0xc0] sm:$0xff]  ;;  %v894_v32 = vld [vmem:[%s1247_s0 + $0xf8] sm:$0xff]  ;;  %v893_v34 = vld [vmem:[%s1247_s0 + $0xf0] sm:$0xff] }
   0xc   :  { %392 = vmatpush1.msra.mxu0 %v876_v19  ;;  %298 = vmatpush1.msra.mxu1 %v859_v20  ;;  %v886_v33 = vld [vmem:[%s1248_s1 + $0x18] sm:$0xff]  ;;  %v889_v36 = vld [vmem:[%s1247_s0 + $0xd0] sm:$0xff] }
   0xd   :  { %331 = vmatprep.mubr.f32.mxu1 %v943_v3  ;;  %393 = vmatprep.subr.mxu0 %v873_v21  ;;  %v890_v35 = vld [vmem:[%s1247_s0 + $0xd8] sm:$0xff] }
   0xe   :  { %866 = vmatmul.mubr.msk.f32.vlgmr.msra.gmra.mxu1 %vm26_vm0, %v856_v15  ;;  %394 = vmatpush1.msra.mxu0 %v872_v22 }
   0xf   :  { %427 = vmatprep.mubr.f32.mxu0 %v943_v3  ;;  %462 = vmatprep.subr.mxu1 %v879_v23 }
  0x10   :  { %880 = vmatmul.mubr.msk.f32.vlgmr.msra.gmra.mxu0 %vm26_vm0, %v871_v24  ;;  %463 = vmatpush1.msra.mxu1 %v878_v25 }
  0x11   :  { %558 = vmatprep.subr.mxu0 %v892_v26  ;;  %464 = vmatprep.subr.mxu1 %v875_v27 }
  0x12   :  { %559 = vmatpush1.msra.mxu0 %v891_v28  ;;  %465 = vmatpush1.msra.mxu1 %v874_v29 }
  0x13   :  { %498 = vmatprep.mubr.f32.mxu1 %v943_v3  ;;  %560 = vmatprep.subr.mxu0 %v888_v30 }
  0x14   :  { %881 = vmatmul.mubr.msk.f32.vlgmr.msra.gmra.mxu1 %vm26_vm0, %v871_v24  ;;  %561 = vmatpush1.msra.mxu0 %v887_v31 }
  0x15   :  { %594 = vmatprep.mubr.f32.mxu0 %v943_v3  ;;  %629 = vmatprep.subr.mxu1 %v894_v32 }
  0x16   :  { %895 = vmatmul.mubr.msk.f32.vlgmr.msra.gmra.mxu0 %vm26_vm0, %v886_v33  ;;  %630 = vmatpush1.msra.mxu1 %v893_v34 }
  0x17   :  { %665 = vmatprep.mubr.f32.mxu1 %v943_v3  ;;  %631 = vmatprep.subr.mxu1 %v890_v35 }
  0x18   :  { %632 = vmatpush1.msra.mxu1 %v889_v36 }
  0x19   :  { %896 = vmatmul.mubr.msk.f32.vlgmr.msra.gmra.mxu1 %vm26_vm0, %v886_v33 }
  0xc6   :  { %v1094_v37 = vpop.f32.mrf.mxu0 }
  0xc7   :  { %v1098_v39 = vpop.f32.mrf.mxu1 }
  0xc8   :  { %v1096_v38 = vpop.f32.mrf.mxu0 }
  0xc9   :  { %v176_v40 = vadd.f32 %v1096_v38, %v1094_v37  ;;  %v1104_v42 = vpop.f32.mrf.mxu1 }
  0xca   :  { %v1102_v41 = vpop.f32.mrf.mxu0 }
  0xcb   :  { %v177_v43 = vadd.f32 %v176_v40, %v1098_v39 }
  0xcc   :  { %v1107_v44 = vpop.f32.mrf.mxu0 }
  0xcd   :  { %v343_v45 = vadd.f32 %v1107_v44, %v1102_v41  ;;  %v178_v46 = vadd.f32 %v177_v43, %v1104_v42 }
  0xce   :  { %v1112_v47 = vpop.f32.mrf.mxu1 }
  0xcf   :  { %v344_v48 = vadd.f32 %v343_v45, %v1112_v47  ;;  %179 = vadd.xlane.f32.xlu0 %v178_v46 }
  0xd0   :  { %v1115_v49 = vpop.f32.mrf.mxu0  ;;  %v1117_v50 = vpop.f32.mrf.mxu1 }
  0xd1   :  { %v345_v51 = vadd.f32 %v344_v48, %v1117_v50 }
  0xd2   :  { %v1120_v52 = vpop.f32.mrf.mxu0 }
  0xd3   :  { %v510_v53 = vadd.f32 %v1120_v52, %v1115_v49  ;;  %346 = vadd.xlane.f32.xlu0 %v345_v51 }
  0xd4   :  { %v1124_v54 = vpop.f32.mrf.mxu1 }
  0xd5   :  { %v511_v55 = vadd.f32 %v510_v53, %v1124_v54 }
  0xd6   :  { %v1127_v56 = vpop.f32.mrf.mxu0  ;;  %v1129_v57 = vpop.f32.mrf.mxu1 }
  0xd7   :  { %v512_v58 = vadd.f32 %v511_v55, %v1129_v57 }
  0xd8   :  { %v1132_v59 = vpop.f32.mrf.mxu0 }
  0xd9   :  { %v677_v60 = vadd.f32 %v1132_v59, %v1127_v56  ;;  %513 = vadd.xlane.f32.xlu1 %v512_v58  ;;  %v1136_v61 = vpop.f32.mrf.mxu1 }
  0xdb   :  { %v678_v62 = vadd.f32 %v677_v60, %v1136_v61  ;;  %v1139_v63 = vpop.f32.mrf.mxu1 }
  0xdd   :  { %v679_v0 = vadd.f32 %v678_v62, %v1139_v63 }
  0xdf   :  { %680 = vadd.xlane.f32.xlu1 %v679_v0 }
 0x158   :  { %v180_v1 = vpop.xlane.xlu0 %179 }
 0x15c   :  { %v347_v2 = vpop.xlane.xlu0 %346 }
 0x15d   :  { %v348_v4 = vadd.f32 %v347_v2, %v180_v1 }
 0x162   :  { %v514_v3 = vpop.xlane.xlu1 %513 }
 0x163   :  { %v515_v5 = vadd.f32 %v514_v3, %v348_v4 }
 0x168   :  { %v681_v6 = vpop.xlane.xlu1 %680 }
 0x169   :  { %v682_v7 = vadd.f32 %v681_v6, %v515_v5  ;;  %v944_v5 = vmov 0  }
 0x16a   :  { %939 = vset.pattern.permute.xlu0 %v944_v5  ;;  %940 = vset.pattern.permute.xlu1 %v944_v5 }
 0x16b   :  { %v1142_v8 = vmul.f32 0.00048828125, %v682_v7 }
 0x16d   :  { %v706_v9 = vsub.f32 %v1102_v41, %v1142_v8  ;;  %v707_v10 = vsub.f32 %v1107_v44, %v1142_v8  ;;  %v708_v11 = vsub.f32 %v1112_v47, %v1142_v8  ;;  %v709_v12 = vsub.f32 %v1117_v50, %v1142_v8 }
 0x16e   :  { %v688_v13 = vsub.f32 %v1094_v37, %v1142_v8  ;;  %v689_v14 = vsub.f32 %v1096_v38, %v1142_v8  ;;  %v690_v15 = vsub.f32 %v1098_v39, %v1142_v8  ;;  %v691_v16 = vsub.f32 %v1104_v42, %v1142_v8 }
 0x16f   :  { %v710_v17 = vmul.f32 %v706_v9, %v706_v9  ;;  %v711_v18 = vmul.f32 %v707_v10, %v707_v10  ;;  %v712_v19 = vmul.f32 %v708_v11, %v708_v11  ;;  %v713_v20 = vmul.f32 %v709_v12, %v709_v12 }
 0x170   :  { %v692_v21 = vmul.f32 %v688_v13, %v688_v13  ;;  %v693_v22 = vmul.f32 %v689_v14, %v689_v14  ;;  %v694_v23 = vmul.f32 %v690_v15, %v690_v15  ;;  %v742_v25 = vsub.f32 %v1127_v56, %v1142_v8 }
 0x171   :  { %v714_v24 = vadd.f32 %v711_v18, %v710_v17  ;;  %v743_v26 = vsub.f32 %v1132_v59, %v1142_v8  ;;  %v744_v27 = vsub.f32 %v1136_v61, %v1142_v8  ;;  %v695_v28 = vmul.f32 %v691_v16, %v691_v16  ;;  %v757_v16 = vld [vmem:[%s1249_s2] sm:$0xff] }
 0x172   :  { %v696_v29 = vadd.f32 %v693_v22, %v692_v21  ;;  %v724_v30 = vsub.f32 %v1115_v49, %v1142_v8  ;;  %v725_v31 = vsub.f32 %v1120_v52, %v1142_v8  ;;  %v745_v33 = vsub.f32 %v1139_v63, %v1142_v8 }
 0x173   :  { %v715_v32 = vadd.f32 %v714_v24, %v712_v19  ;;  %v746_v34 = vmul.f32 %v742_v25, %v742_v25  ;;  %v747_v35 = vmul.f32 %v743_v26, %v743_v26  ;;  %v748_v40 = vmul.f32 %v744_v27, %v744_v27  ;;  %v761_v19 = vld [vmem:[%s1250_s3] sm:$0xff] }
 0x174   :  { %v697_v36 = vadd.f32 %v696_v29, %v694_v23  ;;  %v726_v43 = vsub.f32 %v1124_v54, %v1142_v8  ;;  %v727_v45 = vsub.f32 %v1129_v57, %v1142_v8  ;;  %v728_v51 = vmul.f32 %v724_v30, %v724_v30 }
 0x175   :  { %v716_v46 = vadd.f32 %v715_v32, %v713_v20  ;;  %v750_v48 = vadd.f32 %v747_v35, %v746_v34  ;;  %v729_v53 = vmul.f32 %v725_v31, %v725_v31  ;;  %v749_v58 = vmul.f32 %v745_v33, %v745_v33 }
 0x176   :  { %v698_v55 = vadd.f32 %v697_v36, %v695_v28  ;;  %v730_v62 = vmul.f32 %v726_v43, %v726_v43  ;;  %v731_v2 = vmul.f32 %v727_v45, %v727_v45 }
 0x177   :  { %717 = vadd.xlane.f32.xlu1 %v716_v46  ;;  %v751_v60 = vadd.f32 %v750_v48, %v748_v40  ;;  %v732_v0 = vadd.f32 %v729_v53, %v728_v51 }
 0x178   :  { %699 = vadd.xlane.f32.xlu0 %v698_v55 }
 0x179   :  { %v752_v1 = vadd.f32 %v751_v60, %v749_v58  ;;  %v733_v3 = vadd.f32 %v732_v0, %v730_v62 }
 0x17b   :  { %753 = vadd.xlane.f32.xlu1 %v752_v1  ;;  %v734_v4 = vadd.f32 %v733_v3, %v731_v2 }
 0x17d   :  { %735 = vadd.xlane.f32.xlu0 %v734_v4 }
 0x200   :  { %v718_v7 = vpop.xlane.xlu1 %717 }
 0x201   :  { %v700_v6 = vpop.xlane.xlu0 %699 }
 0x202   :  { %v719_v9 = vadd.f32 %v718_v7, %v700_v6 }
 0x204   :  { %v754_v12 = vpop.xlane.xlu1 %753 }
 0x206   :  { %v736_v10 = vpop.xlane.xlu0 %735 }
 0x207   :  { %v737_v11 = vadd.f32 %v736_v10, %v719_v9 }
 0x209   :  { %v755_v13 = vadd.f32 %v754_v12, %v737_v11 }
 0x20b   :  { %v756_v14 = vmul.f32 0.00048828125, %v755_v13 }
 0x20d   :  { %v758_v15 = vadd.f32 1e-05, %v756_v14 }
 0x20f   :  { %941 = vrsqrt.f32 %v758_v15 }
 0x21c   :  { %v942_v17 = vpop.eup %941 }
 0x21d   :  { %v760_v18 = vmul.f32 %v942_v17, %v757_v16 }
 0x21f   :  { %766 = vperm.xlu0 %939, %v760_v18   ;;  %v762_v20 = vmul.f32 %v760_v18, %v1142_v8 }
 0x221   :  { %v763_v21 = vsub.f32 %v761_v19, %v762_v20 }
 0x223   :  { %775 = vperm.xlu1 %940, %v763_v21  }
 0x29a   :  { %v767_v22 = vpop.permute.xlu0 %766 }
 0x29b   :  { %v769_v23 = vmul.f32 %v767_v22, %v1094_v37  ;;  %v770_v24 = vmul.f32 %v767_v22, %v1096_v38  ;;  %v771_v25 = vmul.f32 %v767_v22, %v1098_v39  ;;  %v772_v26 = vmul.f32 %v767_v22, %v1104_v42 }
 0x29c   :  { %v794_v27 = vmul.f32 %v767_v22, %v1102_v41  ;;  %v795_v28 = vmul.f32 %v767_v22, %v1107_v44  ;;  %v796_v29 = vmul.f32 %v767_v22, %v1112_v47  ;;  %v797_v30 = vmul.f32 %v767_v22, %v1117_v50 }
 0x29d   :  { %v814_v8 = vmul.f32 %v767_v22, %v1115_v49  ;;  %v815_v31 = vmul.f32 %v767_v22, %v1120_v52  ;;  %v816_v37 = vmul.f32 %v767_v22, %v1124_v54  ;;  %v817_v38 = vmul.f32 %v767_v22, %v1129_v57 }
 0x29e   :  { %v834_v39 = vmul.f32 %v767_v22, %v1127_v56  ;;  %v835_v42 = vmul.f32 %v767_v22, %v1132_v59  ;;  %v836_v41 = vmul.f32 %v767_v22, %v1136_v61  ;;  %v837_v44 = vmul.f32 %v767_v22, %v1139_v63  ;;  %v776_v32 = vpop.permute.xlu1 %775 }
 0x29f   :  { %v778_v47 = vadd.f32 %v776_v32, %v769_v23  ;;  %v779_v33 = vadd.f32 %v776_v32, %v770_v24  ;;  %v780_v50 = vadd.f32 %v776_v32, %v771_v25  ;;  %v781_v34 = vadd.f32 %v776_v32, %v772_v26 }
 0x2a0   :  { %v798_v49 = vadd.f32 %v794_v27, %v776_v32  ;;  %v799_v35 = vadd.f32 %v795_v28, %v776_v32  ;;  %v800_v52 = vadd.f32 %v796_v29, %v776_v32  ;;  %v801_v36 = vadd.f32 %v797_v30, %v776_v32 }
 0x2a1   :  { %v782_v54 = vmax.f32 %v778_v47, 0.0  ;;  %v783_v40 = vmax.f32 %v779_v33, 0.0  ;;  %v784_v57 = vmax.f32 %v780_v50, 0.0  ;;  %v785_v43 = vmax.f32 %v781_v34, 0.0 }
 0x2a2   :  { %v802_v56 = vmax.f32 %v798_v49, 0.0  ;;  %v803_v45 = vmax.f32 %v799_v35, 0.0  ;;  %v804_v59 = vmax.f32 %v800_v52, 0.0  ;;  %v805_v46 = vmax.f32 %v801_v36, 0.0 }
 0x2a3   :  { %786 = vst [vmem:[%s1251_s4] sm:$0xff] %v782_v54  ;;  %787 = vst [vmem:[%s1251_s4 + $0x8] sm:$0xff] %v783_v40  ;;  %v818_v61 = vadd.f32 %v814_v8, %v776_v32  ;;  %v819_v63 = vadd.f32 %v815_v31, %v776_v32  ;;  %v820_v48 = vadd.f32 %v816_v37, %v776_v32 }
 0x2a4   :  { %788 = vst [vmem:[%s1251_s4 + $0x10] sm:$0xff] %v784_v57  ;;  %789 = vst [vmem:[%s1251_s4 + $0x18] sm:$0xff] %v785_v43  ;;  %v821_v51 = vadd.f32 %v817_v38, %v776_v32  ;;  %v838_v53 = vadd.f32 %v834_v39, %v776_v32  ;;  %v839_v55 = vadd.f32 %v835_v42, %v776_v32 }
 0x2a5   :  { %917 = vst [vmem:[%s1251_s4 + $0x20] sm:$0xff] %v802_v56  ;;  %918 = vst [vmem:[%s1251_s4 + $0x28] sm:$0xff] %v803_v45  ;;  %v840_v58 = vadd.f32 %v836_v41, %v776_v32  ;;  %v841_v60 = vadd.f32 %v837_v44, %v776_v32  ;;  %v822_v62 = vmax.f32 %v818_v61, 0.0  ;;  %v823_v0 = vmax.f32 %v819_v63, 0.0 }
 0x2a6   :  { %919 = vst [vmem:[%s1251_s4 + $0x30] sm:$0xff] %v804_v59  ;;  %920 = vst [vmem:[%s1251_s4 + $0x38] sm:$0xff] %v805_v46  ;;  %v824_v1 = vmax.f32 %v820_v48, 0.0  ;;  %v825_v2 = vmax.f32 %v821_v51, 0.0  ;;  %v842_v3 = vmax.f32 %v838_v53, 0.0  ;;  %v843_v4 = vmax.f32 %v839_v55, 0.0 }
 0x2a7   :  { %v844_v5 = vmax.f32 %v840_v58, 0.0  ;;  %v845_v6 = vmax.f32 %v841_v60, 0.0  ;;  %925 = vst [vmem:[%s1251_s4 + $0x40] sm:$0xff] %v822_v62  ;;  %926 = vst [vmem:[%s1251_s4 + $0x48] sm:$0xff] %v823_v0 }
 0x2a8   :  { %927 = vst [vmem:[%s1251_s4 + $0x50] sm:$0xff] %v824_v1  ;;  %928 = vst [vmem:[%s1251_s4 + $0x58] sm:$0xff] %v825_v2 }
 0x2a9   :  { %933 = vst [vmem:[%s1251_s4 + $0x60] sm:$0xff] %v842_v3  ;;  %934 = vst [vmem:[%s1251_s4 + $0x68] sm:$0xff] %v843_v4 }
 0x2aa   :  { %935 = vst [vmem:[%s1251_s4 + $0x70] sm:$0xff] %v844_v5  ;;  %936 = vst [vmem:[%s1251_s4 + $0x78] sm:$0xff] %v845_v6 }

</bundles_post_ra>
